<compile_context>
chip_gen: v7x
topology: tpu7x:2x2x1
jax: 0.10.0
libtpu: 0.0.40
codegen_flags: <defaults>
</compile_context>

<pallas_src>
import jax
import jax.numpy as jnp
from jax.experimental import pallas as pl
from jax.experimental.pallas import tpu as pltpu


def _round_up(x, m):
    return ((x + m - 1) // m) * m


def _discriminator_kernel(z_ref, w1_ref, b1_ref, w2_ref, b2_ref, w3_ref, b3_ref, o_ref):
    # z_ref: (TB, z_dim) in compute dtype (bf16 or f32). Weights share that dtype;
    # biases are f32. MXU accumulates in f32 (preferred_element_type).
    z = z_ref[...]  # no redundant upcast: feed the MXU the stored dtype directly

    # Linear(z_dim -> inter_dim) + ReLU
    h1 = jnp.dot(z, w1_ref[...], preferred_element_type=jnp.float32) + b1_ref[...]
    h1 = jnp.maximum(h1, 0.0)

    # Linear(inter_dim -> inter_dim) + ReLU
    h2 = jnp.dot(h1.astype(w2_ref.dtype), w2_ref[...],
                 preferred_element_type=jnp.float32) + b2_ref[...]
    h2 = jnp.maximum(h2, 0.0)

    # Linear(inter_dim -> 1)
    out = jnp.dot(h2.astype(w3_ref.dtype), w3_ref[...],
                  preferred_element_type=jnp.float32) + b3_ref[...]

    # NOTE: (TB, 1) output means a width-1 masked store per tile. Store volume is
    # only 4 B/row vs 32-64 B/row of loads, so this is not the binding cost; a
    # lane-dense (TB,) output would require a sublane->lane relayout of the
    # matvec result inside the kernel (XLU transpose), which is not worth it here.
    o_ref[...] = out.astype(o_ref.dtype)


def discriminatr_z(z, params, *, block_b=1024, use_bf16=True):
    """Forward pass of Discriminatr_z.

    z: (B, z_dim) float32
    params: dict with w1 (z_dim, inter), b1 (1, inter),
                      w2 (inter, inter), b2 (1, inter),
                      w3 (inter, 1),     b3 (1, 1)
    returns: (B, 1) float32
    """
    B, z_dim = z.shape
    inter_dim = params["w1"].shape[1]
    cdt = jnp.bfloat16 if use_bf16 else jnp.float32

    # Cast once in the wrapper. Weights are tiny and grid-invariant; casting z to
    # bf16 halves the HBM traffic that scales with batch.
    w1 = params["w1"].astype(cdt)
    w2 = params["w2"].astype(cdt)
    w3 = params["w3"].astype(cdt)
    b1 = params["b1"].astype(jnp.float32)
    b2 = params["b2"].astype(jnp.float32)
    b3 = params["b3"].astype(jnp.float32)

    # Batch tile: large (amortizes ~0.35 us/grid-step overhead), sublane-aligned
    # (multiple of 8). No host-side padding: grid uses cdiv and Pallas masks the
    # tail tile's out-of-bounds rows on both read and write.
    tb = min(block_b, _round_up(B, 8))
    grid = (pl.cdiv(B, tb),)

    itemsize = jnp.dtype(cdt).itemsize
    weight_bytes = ((z_dim * inter_dim + inter_dim * inter_dim + inter_dim) * itemsize
                    + (inter_dim + inter_dim + 1) * 4)
    cost = pl.CostEstimate(
        flops=2 * B * (z_dim * inter_dim + inter_dim * inter_dim + inter_dim),
        transcendentals=0,
        bytes_accessed=B * z_dim * itemsize + weight_bytes + B * 4,
    )

    out = pl.pallas_call(
        _discriminator_kernel,
        out_shape=jax.ShapeDtypeStruct((B, 1), jnp.float32),
        grid=grid,
        in_specs=[
            # batch-tiled input, double-buffered by the BlockSpec pipeline
            pl.BlockSpec((tb, z_dim), lambda i: (i, 0)),
            # weights/biases: constant index maps -> resident in VMEM across steps
            pl.BlockSpec((z_dim, inter_dim), lambda i: (0, 0)),
            pl.BlockSpec((1, inter_dim), lambda i: (0, 0)),
            pl.BlockSpec((inter_dim, inter_dim), lambda i: (0, 0)),
            pl.BlockSpec((1, inter_dim), lambda i: (0, 0)),
            pl.BlockSpec((inter_dim, 1), lambda i: (0, 0)),
            pl.BlockSpec((1, 1), lambda i: (0, 0)),
        ],
        out_specs=pl.BlockSpec((tb, 1), lambda i: (i, 0)),
        compiler_params=pltpu.CompilerParams(
            # batch tiles are independent -> shard across v7x's two TensorCores
            dimension_semantics=("parallel",),
            # explicit limit with headroom (safe on v5e/v6e 128 MiB and v7x 64 MiB)
            vmem_limit_bytes=32 * 1024 * 1024,
        ),
        cost_estimate=cost,
    )(z.astype(cdt), w1, b1, w2, b2, w3, b3)

    return out


def init_params(key, z_dim, inter_dim):
    """Deterministic synthetic parameters matching nn.Linear shapes (transposed)."""
    ks = jax.random.split(key, 6)

    def linear_init(kw, kb, fan_in, fan_out):
        # mimic PyTorch default uniform(-1/sqrt(fan_in), 1/sqrt(fan_in))
        bound = 1.0 / jnp.sqrt(jnp.float32(fan_in))
        w = jax.random.uniform(kw, (fan_in, fan_out), jnp.float32, -bound, bound)
        b = jax.random.uniform(kb, (1, fan_out), jnp.float32, -bound, bound)
        return w, b

    w1, b1 = linear_init(ks[0], ks[1], z_dim, inter_dim)
    w2, b2 = linear_init(ks[2], ks[3], inter_dim, inter_dim)
    w3, b3 = linear_init(ks[4], ks[5], inter_dim, 1)
    return {"w1": w1, "b1": b1, "w2": w2, "b2": b2, "w3": w3, "b3": b3}


def _reference(z, p):
    h1 = jnp.maximum(z @ p["w1"] + p["b1"], 0.0)
    h2 = jnp.maximum(h1 @ p["w2"] + p["b2"], 0.0)
    return h2 @ p["w3"] + p["b3"]


if __name__ == "__main__":
    B, Z_DIM, INTER_DIM = 8, 16, 32

    key = jax.random.PRNGKey(0)
    kz, kp = jax.random.split(key)
    z = jax.random.normal(kz, (B, Z_DIM), dtype=jnp.float32)
    params = init_params(kp, Z_DIM, INTER_DIM)

    ref = _reference(z, params)

    # Exact-precision path (f32 everywhere): tight tolerance vs the reference.
    out_f32 = jax.block_until_ready(discriminatr_z(z, params, use_bf16=False))
    assert out_f32.shape == (B, 1)
    assert jnp.allclose(out_f32, ref, atol=1e-5, rtol=1e-5)

    # Bandwidth-optimized path (bf16 inputs/weights, f32 accumulation): looser tolerance.
    out_bf16 = jax.block_until_ready(discriminatr_z(z, params, use_bf16=True))
    assert out_bf16.shape == (B, 1)
    assert jnp.allclose(out_bf16, ref, atol=3e-2, rtol=3e-2)

    print("KERNEL_OK")
</pallas_src>

<mosaic_0001>
module attributes {stable_mosaic.version = 11 : i64} {
  func.func @_discriminator_kernel(%arg0: i32, %arg1: memref<8x16xf32, #tpu.memory_space<vmem>>, %arg2: memref<16x32xf32, #tpu.memory_space<vmem>>, %arg3: memref<1x32xf32, #tpu.memory_space<vmem>>, %arg4: memref<32x32xf32, #tpu.memory_space<vmem>>, %arg5: memref<1x32xf32, #tpu.memory_space<vmem>>, %arg6: memref<32x1xf32, #tpu.memory_space<vmem>>, %arg7: memref<1x1xf32, #tpu.memory_space<vmem>>, %arg8: memref<8x1xf32, #tpu.memory_space<vmem>>) attributes {dimension_semantics = [#tpu.dimension_semantics<parallel>], iteration_bounds = array<i64: 1>, scalar_prefetch = 0 : i64, scratch_operands = 0 : i64, tpu.core_type = #tpu.core_type<tc>, window_params = [{transform_indices = @transform_0, window_bounds = array<i64: 8, 16>}, {pipeline_mode = #tpu.pipeline_mode<synchronous>, transform_indices = @transform_1, window_bounds = array<i64: 16, 32>}, {pipeline_mode = #tpu.pipeline_mode<synchronous>, transform_indices = @transform_2, window_bounds = array<i64: 1, 32>}, {pipeline_mode = #tpu.pipeline_mode<synchronous>, transform_indices = @transform_3, window_bounds = array<i64: 32, 32>}, {pipeline_mode = #tpu.pipeline_mode<synchronous>, transform_indices = @transform_4, window_bounds = array<i64: 1, 32>}, {pipeline_mode = #tpu.pipeline_mode<synchronous>, transform_indices = @transform_5, window_bounds = array<i64: 32, 1>}, {pipeline_mode = #tpu.pipeline_mode<synchronous>, transform_indices = @transform_6, window_bounds = array<i64: 1, 1>}, {transform_indices = @transform_7, window_bounds = array<i64: 8, 1>}]} {
    %c0 = arith.constant 0 : index
    %c0_0 = arith.constant 0 : index
    %0 = vector.load %arg1[%c0, %c0_0] : memref<8x16xf32, #tpu.memory_space<vmem>>, vector<8x16xf32>
    %c0_1 = arith.constant 0 : index
    %c0_2 = arith.constant 0 : index
    %1 = vector.load %arg2[%c0_1, %c0_2] : memref<16x32xf32, #tpu.memory_space<vmem>>, vector<16x32xf32>
    %cst = arith.constant dense<0.000000e+00> : vector<8x32xf32>
    %2 = tpu.matmul %0, %1, %cst {dimension_numbers = #tpu.dot_dimension_numbers<[1], [0], [0], [1], [0, 0, 1, 1], [], []>} : vector<8x16xf32>, vector<16x32xf32>, vector<8x32xf32> -> vector<8x32xf32>
    %c0_3 = arith.constant 0 : index
    %c0_4 = arith.constant 0 : index
    %3 = vector.load %arg3[%c0_3, %c0_4] : memref<1x32xf32, #tpu.memory_space<vmem>>, vector<1x32xf32>
    %4 = vector.broadcast %3 : vector<1x32xf32> to vector<8x32xf32>
    %5 = arith.addf %2, %4 : vector<8x32xf32>
    %cst_5 = arith.constant 0.000000e+00 : f32
    %6 = vector.broadcast %cst_5 : f32 to vector<8x32xf32>
    %7 = arith.maximumf %5, %6 : vector<8x32xf32>
    %c0_6 = arith.constant 0 : index
    %c0_7 = arith.constant 0 : index
    %8 = vector.load %arg4[%c0_6, %c0_7] : memref<32x32xf32, #tpu.memory_space<vmem>>, vector<32x32xf32>
    %cst_8 = arith.constant dense<0.000000e+00> : vector<8x32xf32>
    %9 = tpu.matmul %7, %8, %cst_8 {dimension_numbers = #tpu.dot_dimension_numbers<[1], [0], [0], [1], [0, 0, 1, 1], [], []>} : vector<8x32xf32>, vector<32x32xf32>, vector<8x32xf32> -> vector<8x32xf32>
    %c0_9 = arith.constant 0 : index
    %c0_10 = arith.constant 0 : index
    %10 = vector.load %arg5[%c0_9, %c0_10] : memref<1x32xf32, #tpu.memory_space<vmem>>, vector<1x32xf32>
    %11 = vector.broadcast %10 : vector<1x32xf32> to vector<8x32xf32>
    %12 = arith.addf %9, %11 : vector<8x32xf32>
    %cst_11 = arith.constant 0.000000e+00 : f32
    %13 = vector.broadcast %cst_11 : f32 to vector<8x32xf32>
    %14 = arith.maximumf %12, %13 : vector<8x32xf32>
    %c0_12 = arith.constant 0 : index
    %c0_13 = arith.constant 0 : index
    %15 = vector.load %arg6[%c0_12, %c0_13] : memref<32x1xf32, #tpu.memory_space<vmem>>, vector<32x1xf32>
    %cst_14 = arith.constant dense<0.000000e+00> : vector<8x1xf32>
    %16 = tpu.matmul %14, %15, %cst_14 {dimension_numbers = #tpu.dot_dimension_numbers<[1], [0], [0], [1], [0, 0, 1, 1], [], []>} : vector<8x32xf32>, vector<32x1xf32>, vector<8x1xf32> -> vector<8x1xf32>
    %c0_15 = arith.constant 0 : index
    %c0_16 = arith.constant 0 : index
    %17 = vector.load %arg7[%c0_15, %c0_16] : memref<1x1xf32, #tpu.memory_space<vmem>>, vector<1x1xf32>
    %18 = vector.broadcast %17 : vector<1x1xf32> to vector<8x1xf32>
    %19 = arith.addf %16, %18 : vector<8x1xf32>
    %c0_17 = arith.constant 0 : index
    %c0_18 = arith.constant 0 : index
    %20 = vector.load %arg8[%c0_17, %c0_18] : memref<8x1xf32, #tpu.memory_space<vmem>>, vector<8x1xf32>
    tpu.vector_store %arg8[%c0_17, %c0_18], %19 {strides = array<i32>} : memref<8x1xf32, #tpu.memory_space<vmem>>, vector<8x1xf32>,
    return
  }
  func.func @transform_0(%arg0: i32) -> (i32, i32) {
    %c0_i32 = arith.constant 0 : i32
    %c0_i32_0 = arith.constant 0 : i32
    return %arg0, %c0_i32 : i32, i32
  }
  func.func @transform_1(%arg0: i32) -> (i32, i32) {
    %c0_i32 = arith.constant 0 : i32
    %c0_i32_0 = arith.constant 0 : i32
    %c0_i32_1 = arith.constant 0 : i32
    return %c0_i32, %c0_i32_0 : i32, i32
  }
  func.func @transform_2(%arg0: i32) -> (i32, i32) {
    %c0_i32 = arith.constant 0 : i32
    %c0_i32_0 = arith.constant 0 : i32
    %c0_i32_1 = arith.constant 0 : i32
    return %c0_i32, %c0_i32_0 : i32, i32
  }
  func.func @transform_3(%arg0: i32) -> (i32, i32) {
    %c0_i32 = arith.constant 0 : i32
    %c0_i32_0 = arith.constant 0 : i32
    %c0_i32_1 = arith.constant 0 : i32
    return %c0_i32, %c0_i32_0 : i32, i32
  }
  func.func @transform_4(%arg0: i32) -> (i32, i32) {
    %c0_i32 = arith.constant 0 : i32
    %c0_i32_0 = arith.constant 0 : i32
    %c0_i32_1 = arith.constant 0 : i32
    return %c0_i32, %c0_i32_0 : i32, i32
  }
  func.func @transform_5(%arg0: i32) -> (i32, i32) {
    %c0_i32 = arith.constant 0 : i32
    %c0_i32_0 = arith.constant 0 : i32
    %c0_i32_1 = arith.constant 0 : i32
    return %c0_i32, %c0_i32_0 : i32, i32
  }
  func.func @transform_6(%arg0: i32) -> (i32, i32) {
    %c0_i32 = arith.constant 0 : i32
    %c0_i32_0 = arith.constant 0 : i32
    %c0_i32_1 = arith.constant 0 : i32
    return %c0_i32, %c0_i32_0 : i32, i32
  }
  func.func @transform_7(%arg0: i32) -> (i32, i32) {
    %c0_i32 = arith.constant 0 : i32
    %c0_i32_0 = arith.constant 0 : i32
    return %arg0, %c0_i32 : i32, i32
  }
}

</mosaic_0001>

<bundles_post_ra>
// kernel: tpu_custom_call.1
= control target key start
LH: loop header
LB: loop body
LE: loop exit
PB: predicated region body
PF: predicated region fallthrough
CT: control target
= control target key end

     0   :  { %s542_s0 = inlined_call_operand.hbm [shape: f32[8,16], index: 0, kind: input, shape index: {}]   ;;  %s543_s1 = inlined_call_operand.vmem [shape: f32[16,32], index: 1, kind: input, shape index: {}]   ;;  %s544_s2 = inlined_call_operand.hbm [shape: f32[1,32], index: 2, kind: input, shape index: {}]   ;;  %s545_s3 = inlined_call_operand.vmem [shape: f32[32,32], index: 3, kind: input, shape index: {}]   ;;  %s546_s4 = inlined_call_operand.vmem [shape: f32[1,32], index: 4, kind: input, shape index: {}]   ;;  %s547_s5 = inlined_call_operand.vmem [shape: f32[32,1], index: 5, kind: input, shape index: {}]   ;;  %s548_s6 = inlined_call_operand.<no memory space> [shape: f32[1,1], index: 6, kind: input, shape index: {}]   ;;  %s549_s7 = inlined_call_operand.vmem [shape: f32[8,1], index: 7, kind: output, shape index: {}]  }
   0x1   :  { %v12_v0 = vstv %s548_s6 }
   0x2   :  { %13 = vst [vmem:[#allocation2] sm:$0x1] %v12_v0 }
   0x3   :  { %14 = vsyncpa [#allocation4], 0 }
   0x4   :  { %15 = vsyncpa [#allocation6], 0  ;;  %s431_s26 = smov [#allocation3]   ;;  %s432_s28 = smov [#allocation5]  }
   0x5   :  { %s22_s27 = sshll.u32 %s431_s26, 4  ;;  %s34_s29 = sshll.u32 %s432_s28, 4  ;;  %s23_s27 = int_to_ptr.vmem [resolvable:$true] %s22_s27  ;;  %s35_s29 = int_to_ptr.vmem [resolvable:$true] %s34_s29 }
   0x6   :  { %s383_s9 = scalar_lea.hbm %s542_s0, 128 }
   0x7   :  { %p384_p0 = scmp.ne.s32.totalorder %s542_s0, %s383_s9  ;;  %p387_p1 = scmp.lt.u32.totalorder %s383_s9, %s542_s0 }
   0x9   :  { %p389_p2 = pnand %p387_p1, %p384_p0 }
   0xb   :  { %392 = shalt.err (!%p389_p2)
}
   0xc   :  { %s393_s6 = scalar_lea.vmem %s23_s27, 128  ;;  %p398_p4 = scmp.lt.s32.totalorder %s23_s27, %s23_s27 }
   0xd   :  { %p394_p3 = scmp.ne.s32.totalorder %s23_s27, %s393_s6  ;;  %p399_p5 = scmp.lt.s32.totalorder %s393_s6, %s393_s6 }
   0xf   :  { %p400_p6 = por %p399_p5, %p398_p4 }
  0x11   :  { %p401_p7 = pnand %p400_p6, %p394_p3 }
  0x13   :  { %404 = shalt.err (!%p401_p7)
}
  0x14   :  { %25 = dma.hbm_to_vmem [thread:$0]  %s542_s0, 128, %s23_s27, [#allocation4]  }
  0x15   :  { %s405_s18 = scalar_lea.hbm %s544_s2, 16 }
  0x16   :  { %p406_p8 = scmp.ne.s32.totalorder %s544_s2, %s405_s18  ;;  %p409_p9 = scmp.lt.u32.totalorder %s405_s18, %s544_s2 }
  0x18   :  { %p411_p10 = pnand %p409_p9, %p406_p8 }
  0x1a   :  { %414 = shalt.err (!%p411_p10)
}
  0x1b   :  { %s415_s23 = scalar_lea.vmem %s35_s29, 16  ;;  %s419_s24 = scalar_lea.vmem %s35_s29, 32 }
  0x1c   :  { %p416_p11 = scmp.ne.s32.totalorder %s35_s29, %s415_s23  ;;  %p420_p12 = scmp.lt.s32.totalorder %s35_s29, %s35_s29 }
  0x1d   :  { %p421_p13 = scmp.lt.s32.totalorder %s419_s24, %s415_s23 }
  0x1f   :  { %p422_p0 = por %p421_p13, %p420_p12 }
  0x21   :  { %p423_p1 = pnand %p422_p0, %p416_p11 }
  0x23   :  { %426 = shalt.err (!%p423_p1)
}
  0x24   :  { %37 = dma.hbm_to_vmem [thread:$0]  %s544_s2, 16, %s35_s29, [#allocation6]  }
  0x25   :  { %427 = dma.done.wait [#allocation4], 128  }
  0x26   :  { %428 = vsyncadd [#allocation4], 4294967168 }
  0x27   :  { %429 = dma.done.wait [#allocation6], 16  }
  0x28   :  { %430 = vsyncadd [#allocation6], 4294967280  ;;  %v433_v1 = vmov 0.0|0.0   ;;  %vm434_vm0 = vmmov 0   ;;  %v435_v2 = vmov 0.0   ;;  %v53_v3 = vld [vmem:[%s543_s1] sm:$0xff] }
  0x29   :  { %363 = vmatprep.subr.bf16.mxu0 %v433_v1  ;;  %338 = vmatprep.mubr.msk.f32.mxu0 %vm434_vm0, %v435_v2  ;;  %v54_v4 = vld [vmem:[%s543_s1 + $0x8] sm:$0xff]  ;;  %v137_v6 = vld [vmem:[%s545_s3] sm:$0xff]  ;;  %vm62_vm1 = vcmask 130048   ;;  %v139_v10 = vld [vmem:[%s545_s3 + $0x10] sm:$0xff]  ;;  %vm148_vm2 = vcmask 261120   ;;  %vm307_vm3 = vcmask 7168  }
  0x2a   :  { %366 = vmatprep.subr.bf16.mxu1 %v433_v1  ;;  %349 = vmatprep.mubr.msk.f32.mxu1 %vm434_vm0, %v435_v2  ;;  %v364_v5 = vpack.c.bf16 %v54_v4, %v53_v3  ;;  %v138_v7 = vld [vmem:[%s545_s3 + $0x8] sm:$0xff]  ;;  %v140_v11 = vld [vmem:[%s545_s3 + $0x18] sm:$0xff]  ;;  %v223_v13 = vld [vmem:[%s547_s5] sm:$0xff] }
  0x2b   :  { %v367_v8 = vpack.c.bf16 %v138_v7, %v137_v6  ;;  %v52_v9 = vld [vmem:[#allocation3] sm:$0xff]  ;;  %v370_v12 = vpack.c.bf16 %v140_v11, %v139_v10  ;;  %v315_v16 = vld [vmem:[#allocation5] ss:$0 sm:$0xff]  ;;  %v225_v21 = vld [vmem:[%s547_s5 + $0x10] sm:$0xff] }
  0x2c   :  { %365 = vmatpush3.bf16.msra.mxu0 %v364_v5  ;;  %v224_v14 = vld [vmem:[%s547_s5 + $0x8] sm:$0xff]  ;;  %v226_v22 = vld [vmem:[%s547_s5 + $0x18] sm:$0xff]  ;;  %v317_v24 = vld [vmem:[%s546_s4] ss:$0 sm:$0xff] }
  0x2d   :  { %368 = vmatpush3.bf16.msra.mxu1 %v367_v8  ;;  %372 = vmatprep.subr.bf16.mxu0 %v433_v1  ;;  %v373_v15 = vpack.c.bf16 %v224_v14, %v223_v13  ;;  %v376_v23 = vpack.c.bf16 %v226_v22, %v225_v21  ;;  %v319_v29 = vld [vmem:[#allocation2] ss:$0 sm:$0xff] }
  0x2e   :  { %369 = vmatprep.subr.bf16.mxu1 %v433_v1 }
  0x2f   :  { %339 = vmatmul.mubr.msk.f32.vlgmr.msra.gmra.mrb[0].mxu0 %vm62_vm1, %v52_v9 }
  0x30   :  { %360 = vmatprep.mubr.msk.f32.mxu0 %vm434_vm0, %v435_v2  ;;  %374 = vmatpush3.bf16.msra.mxu0 %v373_v15 }
  0x31   :  { %371 = vmatpush3.bf16.msra.mxu1 %v370_v12  ;;  %375 = vmatprep.subr.bf16.mxu0 %v433_v1 }
  0x34   :  { %377 = vmatpush3.bf16.msra.mxu0 %v376_v23 }
 0x102   :  { %v132_v17 = vpop.f32.mrb[0].mxu0 }
 0x103   :  { %v133_v18 = vadd.f32 %v315_v16, %v132_v17  ;;  %v340_v19 = vpop.f32.mrb[1].mxu0 }
 0x105   :  { %v136_v20 = vmax.f32 %v133_v18, 0.0 }
 0x107   :  { %350 = vmatmul.mubr.msk.f32.vlgmr.msra.gmra.mrb[0].mxu1 %vm148_vm2, %v136_v20 }
 0x1da   :  { %v218_v25 = vpop.f32.mrb[0].mxu1 }
 0x1db   :  { %v219_v26 = vadd.f32 %v317_v24, %v218_v25  ;;  %v351_v27 = vpop.f32.mrb[1].mxu1 }
 0x1dd   :  { %v222_v28 = vmax.f32 %v219_v26, 0.0 }
 0x1df   :  { %361 = vmatmul.mubr.msk.f32.vlgmr.msra.gmra.mrb[2].mxu0 %vm148_vm2, %v222_v28 }
 0x2b2   :  { %v303_v30 = vpop.f32.mrb[2].mxu0 }
 0x2b3   :  { %v304_v31 = vadd.f32 %v319_v29, %v303_v30  ;;  %v362_v32 = vpop.f32.mrb[3].mxu0 }
 0x2b5   :  { %308 = vst.msk [vmem:[%s549_s7] sm:$0xff] %vm307_vm3, %v304_v31 }
 0x2b6   :  { %313 = vsyncpa [#allocation4], 1 }
 0x2b7   :  { %314 = vsyncpa [#allocation6], 1 }

</bundles_post_ra>
